<compile_context>
chip_gen: v5e
topology: v5e:2x2
jax: 0.10.0
libtpu: 0.0.40
codegen_flags: <defaults>
</compile_context>

<pallas_src>
import functools

import jax
import jax.numpy as jnp
from jax.experimental import pallas as pl
from jax.experimental.pallas import tpu as pltpu

NUM_CLASSES = 3
BN_EPS = 1e-5


def _round_up(v, m):
    return (v + m - 1) // m * m


# ----------------------------- tiled matmul (+bias, +residual, +ReLU) -----------------------------

def _matmul_kernel(*refs, relu, has_residual):
    if has_residual:
        x_ref, w_ref, b_ref, r_ref, o_ref, acc_ref = refs
    else:
        x_ref, w_ref, b_ref, o_ref, acc_ref = refs
        r_ref = None
    k = pl.program_id(2)

    @pl.when(k == 0)
    def _():
        acc_ref[...] = jnp.zeros_like(acc_ref)

    acc_ref[...] += jnp.dot(x_ref[...], w_ref[...], preferred_element_type=jnp.float32)

    @pl.when(k == pl.num_programs(2) - 1)
    def _():
        out = acc_ref[...] + b_ref[...]
        if r_ref is not None:
            out = out + r_ref[...]
        if relu:
            out = jnp.maximum(out, 0.0)
        o_ref[...] = out.astype(o_ref.dtype)


def pallas_matmul_bias(x, w, b, *, relu, residual=None):
    # x: (M, K) f32  w: (K, N) f32  b: (1, N) f32  [residual: (M, N) f32]  ->  (M, N) f32
    M, K = x.shape
    N = w.shape[1]

    # tile sizes (bf16-friendly: sublane multiples of 16, lane multiples of 128)
    Mp0 = _round_up(M, 16)
    tm = min(256, Mp0)
    Mp = _round_up(Mp0, tm)
    Np0 = _round_up(N, 128)
    tn = min(256, Np0)
    Np = _round_up(Np0, tn)
    Kp0 = _round_up(K, 128)
    tk = min(256, Kp0)
    Kp = _round_up(Kp0, tk)

    xp = jnp.pad(x.astype(jnp.bfloat16), ((0, Mp - M), (0, Kp - K)))
    wp = jnp.pad(w.astype(jnp.bfloat16), ((0, Kp - K), (0, Np - N)))
    bp = jnp.pad(b.astype(jnp.float32), ((0, 0), (0, Np - N)))

    operands = [xp, wp, bp]
    in_specs = [
        pl.BlockSpec((tm, tk), lambda i, j, k: (i, k)),
        pl.BlockSpec((tk, tn), lambda i, j, k: (k, j)),
        pl.BlockSpec((1, tn), lambda i, j, k: (0, j)),
    ]
    if residual is not None:
        rp = jnp.pad(residual.astype(jnp.float32), ((0, Mp - M), (0, Np - N)))
        operands.append(rp)
        in_specs.append(pl.BlockSpec((tm, tn), lambda i, j, k: (i, j)))

    out = pl.pallas_call(
        functools.partial(_matmul_kernel, relu=relu, has_residual=residual is not None),
        out_shape=jax.ShapeDtypeStruct((Mp, Np), jnp.float32),
        grid=(Mp // tm, Np // tn, Kp // tk),
        in_specs=in_specs,
        out_specs=pl.BlockSpec((tm, tn), lambda i, j, k: (i, j)),
        scratch_shapes=[pltpu.VMEM((tm, tn), jnp.float32)],
        compiler_params=pltpu.CompilerParams(
            dimension_semantics=("parallel", "parallel", "arbitrary")),
    )(*operands)
    return out[:M, :N]


# ----------------------------- maxpool (9-way elementwise max tree) -----------------------------

def _max9_kernel(*refs):
    o_ref = refs[-1]
    m = refs[0][...]
    for r in refs[1:-1]:
        m = jnp.maximum(m, r[...])
    o_ref[...] = m


def max_pool_3x3_s2(x):
    # NHWC MaxPool2d(kernel_size=3, stride=2, padding=1)
    N, H, W, C = x.shape
    xp = jnp.pad(x, ((0, 0), (1, 1), (1, 1), (0, 0)), constant_values=-jnp.inf)
    Ho = (H + 2 - 3) // 2 + 1
    Wo = (W + 2 - 3) // 2 + 1
    views = []
    for i in range(3):
        for j in range(3):
            views.append(xp[:, i:i + 2 * Ho:2, j:j + 2 * Wo:2, :])
    if (Wo * C) % 128 == 0:              # lane-dense slab when possible
        views2d = [v.reshape(N * Ho, Wo * C) for v in views]
    else:
        views2d = [v.reshape(N * Ho * Wo, C) for v in views]
    R, Cc = views2d[0].shape
    Rp0 = _round_up(R, 8)
    tr = min(512, Rp0)
    Rp = _round_up(Rp0, tr)
    if Rp != R:
        views2d = [jnp.pad(v, ((0, Rp - R), (0, 0))) for v in views2d]
    spec = pl.BlockSpec((tr, Cc), lambda r: (r, 0))
    out = pl.pallas_call(
        _max9_kernel,
        out_shape=jax.ShapeDtypeStruct((Rp, Cc), jnp.float32),
        grid=(Rp // tr,),
        in_specs=[spec] * 9,
        out_specs=spec,
        compiler_params=pltpu.CompilerParams(dimension_semantics=("parallel",)),
    )(*views2d)
    return out[:R].reshape(N, Ho, Wo, C)


# ----------------------------- global average pool -----------------------------

def _gap_kernel(x_ref, o_ref):
    o_ref[...] = jnp.mean(x_ref[...], axis=1)


def global_avg_pool(x):
    # NHWC AdaptiveAvgPool2d((1,1)) + flatten -> lane-dense (N, C)
    N, H, W, C = x.shape
    flat = x.reshape(N, H * W, C)
    return pl.pallas_call(
        _gap_kernel,
        out_shape=jax.ShapeDtypeStruct((N, C), jnp.float32),
        grid=(1,),
        in_specs=[pl.BlockSpec((N, H * W, C), lambda i: (0, 0, 0))],
        out_specs=pl.BlockSpec((N, C), lambda i: (0, 0)),
    )(flat)


# ----------------------------- fused classifier head -----------------------------

def _head_kernel(f_ref, w1_ref, b1_ref, s_ref, t_ref, w2_ref, b2_ref, o_ref):
    # Linear(2048->512) + ReLU + Dropout(eval) + BatchNorm1d(512, folded) + Linear(512->num_classes)
    h = jnp.dot(f_ref[...], w1_ref[...], preferred_element_type=jnp.float32) + b1_ref[...]
    h = jnp.maximum(h, 0.0)
    # TODO(synk): Dropout is an identity in eval/inference mode; training-mode random mask not implemented.
    h = h * s_ref[...] + t_ref[...]
    o_ref[...] = (jnp.dot(h, w2_ref[...], preferred_element_type=jnp.float32) + b2_ref[...]).astype(o_ref.dtype)


# ----------------------------- conv wrappers (NHWC, BN folded) -----------------------------

def _im2col_nhwc(x, kh, kw, stride, pad):
    # x: (N, H, W, C) -> patches (N*Ho*Wo, kh*kw*C), K-ordering = (kh slow, kw, C fast)
    # TODO(synk): 3x3/7x7 patches are still materialized in HBM; an in-kernel shifted-window
    # gather over the K grid axis would avoid the kh*kw read amplification.
    N, H, W, C = x.shape
    xp = jnp.pad(x, ((0, 0), (pad, pad), (pad, pad), (0, 0)))
    Ho = (H + 2 * pad - kh) // stride + 1
    Wo = (W + 2 * pad - kw) // stride + 1
    cols = []
    for i in range(kh):
        for j in range(kw):
            cols.append(xp[:, i:i + stride * Ho:stride, j:j + stride * Wo:stride, :])
    patches = jnp.stack(cols, axis=3)                       # (N, Ho, Wo, kh*kw, C)
    return patches.reshape(N * Ho * Wo, kh * kw * C), Ho, Wo


def conv_bn(x, conv_w, bn, *, stride, pad, relu, residual=None):
    # Conv2d (no bias, torch resnet convention) + eval-mode BatchNorm2d folded
    # + optional ReLU + optional fused residual add (applied before ReLU).
    N = x.shape[0]
    cout, cin, kh, kw = conv_w.shape
    scale = bn["gamma"] / jnp.sqrt(bn["var"] + BN_EPS)
    shift = bn["beta"] - bn["mean"] * scale
    # torch weight (Cout, Cin, kh, kw) -> (kh*kw*Cin, Cout), matching the patch K-ordering
    wmat = conv_w.transpose(2, 3, 1, 0).reshape(kh * kw * cin, cout) * scale[None, :]
    if kh == 1 and kw == 1 and pad == 0:
        xs = x[:, ::stride, ::stride, :] if stride > 1 else x
        Ho, Wo = xs.shape[1], xs.shape[2]
        patches = xs.reshape(N * Ho * Wo, cin)              # no im2col for 1x1 convs
    else:
        patches, Ho, Wo = _im2col_nhwc(x, kh, kw, stride, pad)
    res2d = residual.reshape(N * Ho * Wo, cout) if residual is not None else None
    y = pallas_matmul_bias(patches, wmat, shift.reshape(1, cout), relu=relu, residual=res2d)
    return y.reshape(N, Ho, Wo, cout)


# ----------------------------- deterministic parameter init -----------------------------
# TODO(synk): `pretrained=True` ImageNet weights are not loadable here; parameters are deterministic
# random values with the exact ResNet50 shapes instead of an ImageNet checkpoint.

def _conv_init(key, cout, cin, kh, kw):
    fan_in = cin * kh * kw
    return jax.random.normal(key, (cout, cin, kh, kw), jnp.float32) * (2.0 / fan_in) ** 0.5


def _bn_init(key, c):
    k1, k2 = jax.random.split(key)
    return dict(
        gamma=1.0 + 0.1 * jax.random.normal(k1, (c,), jnp.float32),
        beta=0.1 * jax.random.normal(k2, (c,), jnp.float32),
        mean=jnp.zeros((c,), jnp.float32),
        var=jnp.ones((c,), jnp.float32),
    )


def _linear_init(key, fin, fout):
    kw_, kb = jax.random.split(key)
    bound = 1.0 / (fin ** 0.5)
    w = jax.random.uniform(kw_, (fout, fin), jnp.float32, -bound, bound)
    b = jax.random.uniform(kb, (fout,), jnp.float32, -bound, bound)
    return w, b


def _bottleneck_init(key, inplanes, planes, stride):
    ks = jax.random.split(key, 8)
    p = dict(
        conv1=_conv_init(ks[0], planes, inplanes, 1, 1), bn1=_bn_init(ks[1], planes),
        conv2=_conv_init(ks[2], planes, planes, 3, 3),   bn2=_bn_init(ks[3], planes),
        conv3=_conv_init(ks[4], planes * 4, planes, 1, 1), bn3=_bn_init(ks[5], planes * 4),
        stride=stride,
    )
    if stride != 1 or inplanes != planes * 4:
        p["down_conv"] = _conv_init(ks[6], planes * 4, inplanes, 1, 1)
        p["down_bn"] = _bn_init(ks[7], planes * 4)
    return p


def _make_layer(key, inplanes, planes, blocks, stride):
    keys = jax.random.split(key, blocks)
    layer = [_bottleneck_init(keys[0], inplanes, planes, stride)]
    inplanes = planes * 4
    for i in range(1, blocks):
        layer.append(_bottleneck_init(keys[i], inplanes, planes, 1))
    return layer, inplanes


def init_params(key):
    ks = jax.random.split(key, 9)
    params = {}
    params["conv1"] = _conv_init(ks[0], 64, 3, 7, 7)
    params["bn1"] = _bn_init(ks[1], 64)
    inplanes = 64
    params["layer1"], inplanes = _make_layer(ks[2], inplanes, 64, 3, 1)
    params["layer2"], inplanes = _make_layer(ks[3], inplanes, 128, 4, 2)
    params["layer3"], inplanes = _make_layer(ks[4], inplanes, 256, 6, 2)
    params["layer4"], inplanes = _make_layer(ks[5], inplanes, 512, 3, 2)
    # custom head: Linear(2048,512) -> ReLU -> Dropout -> BatchNorm1d(512) -> Linear(512,num_classes)
    params["fc1_w"], params["fc1_b"] = _linear_init(ks[6], inplanes, 512)
    params["fc_bn"] = _bn_init(ks[7], 512)
    params["fc2_w"], params["fc2_b"] = _linear_init(ks[8], 512, NUM_CLASSES)
    return params


# ----------------------------- forward pass -----------------------------

def bottleneck_forward(x, p):
    if "down_conv" in p:
        identity = conv_bn(x, p["down_conv"], p["down_bn"],
                           stride=p["stride"], pad=0, relu=False)
    else:
        identity = x
    out = conv_bn(x, p["conv1"], p["bn1"], stride=1, pad=0, relu=True)
    out = conv_bn(out, p["conv2"], p["bn2"], stride=p["stride"], pad=1, relu=True)
    # residual add + ReLU fused into conv3's matmul epilogue
    out = conv_bn(out, p["conv3"], p["bn3"], stride=1, pad=0, relu=True, residual=identity)
    return out


def skin_disease_cnn_forward(params, x_nchw):
    x = x_nchw.transpose(0, 2, 3, 1)  # NCHW (PyTorch input convention) -> NHWC
    # ResNet50 stem
    x = conv_bn(x, params["conv1"], params["bn1"], stride=2, pad=3, relu=True)
    x = max_pool_3x3_s2(x)
    # 4 bottleneck stages
    for layer_name in ("layer1", "layer2", "layer3", "layer4"):
        for block in params[layer_name]:
            x = bottleneck_forward(x, block)
    feats = global_avg_pool(x)  # (N, 2048)

    # fused classifier head; pad batch rows to >= 8 to avoid a degenerate sublane tile
    N, F = feats.shape
    Mh = max(8, _round_up(N, 8))
    feats_p = jnp.pad(feats, ((0, Mh - N), (0, 0)))
    bn = params["fc_bn"]
    inv = 1.0 / jnp.sqrt(bn["var"] + BN_EPS)
    scale = (bn["gamma"] * inv).reshape(1, -1)
    shift = (bn["beta"] - bn["mean"] * bn["gamma"] * inv).reshape(1, -1)
    w1t = params["fc1_w"].T                     # (2048, 512)
    w2t = params["fc2_w"].T                     # (512, num_classes)
    b1 = params["fc1_b"].reshape(1, -1)
    b2 = params["fc2_b"].reshape(1, -1)

    def fs(shape):
        return pl.BlockSpec(shape, lambda i, _s=shape: tuple(0 for _ in _s))

    out = pl.pallas_call(
        _head_kernel,
        out_shape=jax.ShapeDtypeStruct((Mh, NUM_CLASSES), jnp.float32),
        grid=(1,),
        in_specs=[fs((Mh, F)), fs(w1t.shape), fs(b1.shape), fs(scale.shape),
                  fs(shift.shape), fs(w2t.shape), fs(b2.shape)],
        out_specs=fs((Mh, NUM_CLASSES)),
    )(feats_p, w1t, b1, scale, shift, w2t, b2)
    return out[:N]


if __name__ == "__main__":
    key = jax.random.PRNGKey(0)
    pkey, xkey = jax.random.split(key)
    params = init_params(pkey)
    x = jax.random.normal(xkey, (2, 3, 32, 32), jnp.float32)  # NCHW, 3-channel image
    logits = skin_disease_cnn_forward(params, x)
    jax.block_until_ready(logits)
    assert logits.shape == (2, NUM_CLASSES)
    assert bool(jnp.all(jnp.isfinite(logits)))
    print("KERNEL_OK")
</pallas_src>

<mosaic_0001>
module attributes {stable_mosaic.version = 11 : i64} {
  func.func @_matmul_kernel(%arg0: i32, %arg1: i32, %arg2: i32, %arg3: memref<256x256xbf16, #tpu.memory_space<vmem>>, %arg4: memref<256x128xbf16, #tpu.memory_space<vmem>>, %arg5: memref<1x128xf32, #tpu.memory_space<vmem>>, %arg6: memref<256x128xf32, #tpu.memory_space<vmem>>, %arg7: memref<256x128xf32, #tpu.memory_space<vmem>>) attributes {dimension_semantics = [#tpu.dimension_semantics<parallel>, #tpu.dimension_semantics<parallel>, #tpu.dimension_semantics<arbitrary>], iteration_bounds = array<i64: 2, 1, 1>, scalar_prefetch = 0 : i64, scratch_operands = 1 : i64, tpu.core_type = #tpu.core_type<tc>, window_params = [{transform_indices = @transform_0, window_bounds = array<i64: 256, 256>}, {transform_indices = @transform_1, window_bounds = array<i64: 256, 128>}, {transform_indices = @transform_2, window_bounds = array<i64: 1, 128>}, {transform_indices = @transform_3, window_bounds = array<i64: 256, 128>}]} {
    %c0_i32 = arith.constant 0 : i32
    %0 = arith.cmpi eq, %arg2, %c0_i32 : i32
    %1 = arith.extui %0 : i1 to i32
    %c0_i32_0 = arith.constant 0 : i32
    %2 = arith.cmpi ne, %1, %c0_i32_0 : i32
    scf.if %2 {
      %cst_10 = arith.constant 0.000000e+00 : f32
      %12 = vector.broadcast %cst_10 : f32 to vector<256x128xf32>
      %c0_11 = arith.constant 0 : index
      %c0_12 = arith.constant 0 : index
      %13 = vector.load %arg7[%c0_11, %c0_12] : memref<256x128xf32, #tpu.memory_space<vmem>>, vector<256x128xf32>
      tpu.vector_store %arg7[%c0_11, %c0_12], %12 {strides = array<i32>} : memref<256x128xf32, #tpu.memory_space<vmem>>, vector<256x128xf32>,
    } else {
    }
    %c0 = arith.constant 0 : index
    %c0_1 = arith.constant 0 : index
    %3 = vector.load %arg7[%c0, %c0_1] : memref<256x128xf32, #tpu.memory_space<vmem>>, vector<256x128xf32>
    %c0_2 = arith.constant 0 : index
    %c0_3 = arith.constant 0 : index
    %4 = vector.load %arg3[%c0_2, %c0_3] : memref<256x256xbf16, #tpu.memory_space<vmem>>, vector<256x256xbf16>
    %c0_4 = arith.constant 0 : index
    %c0_5 = arith.constant 0 : index
    %5 = vector.load %arg4[%c0_4, %c0_5] : memref<256x128xbf16, #tpu.memory_space<vmem>>, vector<256x128xbf16>
    %cst = arith.constant dense<0.000000e+00> : vector<256x128xf32>
    %6 = tpu.matmul %4, %5, %cst {dimension_numbers = #tpu.dot_dimension_numbers<[1], [0], [0], [1], [0, 0, 1, 1], [], []>} : vector<256x256xbf16>, vector<256x128xbf16>, vector<256x128xf32> -> vector<256x128xf32>
    %7 = arith.addf %3, %6 : vector<256x128xf32>
    %c0_6 = arith.constant 0 : index
    %c0_7 = arith.constant 0 : index
    %8 = vector.load %arg7[%c0_6, %c0_7] : memref<256x128xf32, #tpu.memory_space<vmem>>, vector<256x128xf32>
    tpu.vector_store %arg7[%c0_6, %c0_7], %7 {strides = array<i32>} : memref<256x128xf32, #tpu.memory_space<vmem>>, vector<256x128xf32>,
    %c0_i32_8 = arith.constant 0 : i32
    %9 = arith.cmpi eq, %arg2, %c0_i32_8 : i32
    %10 = arith.extui %9 : i1 to i32
    %c0_i32_9 = arith.constant 0 : i32
    %11 = arith.cmpi ne, %10, %c0_i32_9 : i32
    scf.if %11 {
      %c0_10 = arith.constant 0 : index
      %c0_11 = arith.constant 0 : index
      %12 = vector.load %arg7[%c0_10, %c0_11] : memref<256x128xf32, #tpu.memory_space<vmem>>, vector<256x128xf32>
      %c0_12 = arith.constant 0 : index
      %c0_13 = arith.constant 0 : index
      %13 = vector.load %arg5[%c0_12, %c0_13] : memref<1x128xf32, #tpu.memory_space<vmem>>, vector<1x128xf32>
      %14 = vector.broadcast %13 : vector<1x128xf32> to vector<256x128xf32>
      %15 = arith.addf %12, %14 : vector<256x128xf32>
      %cst_14 = arith.constant 0.000000e+00 : f32
      %16 = vector.broadcast %cst_14 : f32 to vector<256x128xf32>
      %17 = arith.maximumf %15, %16 : vector<256x128xf32>
      %c0_15 = arith.constant 0 : index
      %c0_16 = arith.constant 0 : index
      %18 = vector.load %arg6[%c0_15, %c0_16] : memref<256x128xf32, #tpu.memory_space<vmem>>, vector<256x128xf32>
      tpu.vector_store %arg6[%c0_15, %c0_16], %17 {strides = array<i32>} : memref<256x128xf32, #tpu.memory_space<vmem>>, vector<256x128xf32>,
    } else {
    }
    return
  }
  func.func @transform_0(%arg0: i32, %arg1: i32, %arg2: i32) -> (i32, i32) {
    %c0_i32 = arith.constant 0 : i32
    return %arg0, %arg2 : i32, i32
  }
  func.func @transform_1(%arg0: i32, %arg1: i32, %arg2: i32) -> (i32, i32) {
    %c0_i32 = arith.constant 0 : i32
    return %arg2, %arg1 : i32, i32
  }
  func.func @transform_2(%arg0: i32, %arg1: i32, %arg2: i32) -> (i32, i32) {
    %c0_i32 = arith.constant 0 : i32
    %c0_i32_0 = arith.constant 0 : i32
    return %c0_i32, %arg1 : i32, i32
  }
  func.func @transform_3(%arg0: i32, %arg1: i32, %arg2: i32) -> (i32, i32) {
    %c0_i32 = arith.constant 0 : i32
    return %arg0, %arg1 : i32, i32
  }
}

</mosaic_0001>

<bundles_post_ra>
// kernel: tpu_custom_call.1
= control target key start
LH: loop header
LB: loop body
LE: loop exit
PB: predicated region body
PF: predicated region fallthrough
CT: control target
= control target key end

     0   :  { %s1984_s0 = inlined_call_operand.hbm [shape: bf16[512,256], index: 0, kind: input, shape index: {}]   ;;  %s1985_s1 = inlined_call_operand.hbm [shape: bf16[256,128], index: 1, kind: input, shape index: {}]   ;;  %s1986_s2 = inlined_call_operand.vmem [shape: f32[1,128], index: 2, kind: input, shape index: {}]   ;;  %s1987_s3 = inlined_call_operand.hbm [shape: f32[512,128], index: 3, kind: output, shape index: {}]  }
   0x1   :  { %1988 = sst [smem:[#allocation12_spill]] %s1985_s1 }
   0x2   :  { %8 = vsyncpa [#allocation4], 0 }
   0x3   :  { %10 = vsyncpa [#allocation4 + $0x1], 0 }
   0x4   :  { %11 = vsyncpa [#allocation7], 0 }
   0x5   :  { %12 = vsyncpa [#allocation5], 0 }
   0x6   :  { %14 = vsyncpa [#allocation5 + $0x1], 0  ;;  %s1693_s12 = smov 0   ;;  %s1695_s13 = smov 0  }
   0x7   :  { %s1697_s14 = smov 0   ;;  %s1699_s15 = smov 0  }
   0x8   :  { %s1701_s16 = smov 0   ;;  %s1703_s17 = smov 0  }
   0x9 LB: > { %s1160_s18 = sadd.s32 4294967295, %s1664_s17   ;;  %s1161_s19 = sadd.s32 4294967294, %s1664_s17   ;;  %s1664_s17 = sphi %s1703_s17, %s20_s17   ;;  %s1660_s16 = sphi %s1701_s16, %s2001_s16   ;;  %s1656_s15 = sphi %s1699_s15, %s2000_s15   ;;  %s1652_s14 = sphi %s1697_s14, %s1999_s14   ;;  %s1648_s13 = sphi %s1695_s13, %s1998_s13   ;;  %s1644_s12 = sphi %s1693_s12, %s1997_s12  }
   0xa   : > { %p61_p0 = scmp.ne.s32.totalorder %s1648_s13, %s1644_s12  ;;  %p1727_p1 = scmp.eq.s32.totalorder %s1160_s18, 0 }
   0xb   : > { %p1731_p2 = scmp.eq.s32.totalorder %s1160_s18, 1  ;;  %p147_p3 = scmp.eq.s32.totalorder %s1161_s19, 1 }
   0xc   : > { %p1737_p4 = por %p1727_p1, %p61_p0  ;;  %p1162_p5 = scmp.ge.s32.totalorder %s1664_s17, 1 }
   0xd   : > { %p1742_p6 = por %p147_p3, %p61_p0  ;;  %p154_p7 = scmp.lt.s32.totalorder %s1664_s17, 3 }
   0xe   : > { %s1993_s1 = sld [smem:[#allocation12_spill]]  ;;  %s1666_s28 = smov [#allocation6]  }
   0xf   : > { %p1750_p8 = pnand %p1162_p5, %p154_p7  ;;  %s171_s29 = sshll.u32 %s1666_s28, 4  ;;  %s172_s29 = int_to_ptr.vmem [resolvable:$true] %s171_s29 }
  0x10   : > { %p1165_p11 = scmp.ge.s32.totalorder %s1664_s17, 2  ;;  %s1667_s30 = smov 64  }
  0x11   : > { %p1446_p9 = pneg %p1750_p8  ;;  %s1668_s4 = smov 4  }
  0x12   : > { %s39_s5 = sadd.s32 1, %s1660_s16  ;;  %s48_s6 = sadd.s32 1, %s1652_s14 }
  0x13   : > { %p1447_p10 = pnand %p1446_p9, %p1727_p1  ;;  %p41_p12 = scmp.ge.s32.totalorder %s39_s5, 2 }
  0x14   : > { %s169_s26 = sshll.u32 %s1993_s1, 4  ;;  %p55_p13 = scmp.ne.s32.totalorder %s1652_s14, %s1648_s13  ;;  %s170_s26 = int_to_ptr.hbm [resolvable:$true] %s169_s26 }
  0x15   : > { %1449 = dma.hbm_to_vmem [thread:$0]  (!%p1447_p10), %s170_s26, 2048, %s172_s29, [#allocation7], %s1667_s30, %s1667_s30, %s1668_s4  }
  0x16   : > { %p56_p0 = scmp.eq.s32.totalorder %s1664_s17, 0  ;;  %s2003_s5 = smov (%p41_p12, %s39_s5), 0 }
  0x17   : > { %p1772_p5 = por %p1731_p2, %p55_p13  ;;  %s43_s9 = ssub.s32 %s1660_s16, %s2003_s5 }
  0x18   : > { %p1766_p3 = por %p56_p0, %p55_p13  ;;  %p1459_p7 = scmp.lt.s32.totalorder %s1664_s17, 2 }
  0x19   : > { %p46_p9 = scmp.eq.s32.totalorder %s43_s9, 0  ;;  %s191_s10 = sand.u32 1, %s1652_s14  }
  0x1a   : > { %s1166_s11 = sshll.u32 %s191_s10, 8  ;;  %s1372_s19 = sshll.u32 %s1660_s16, 8 }
  0x1b   : > { %s1781_s18 = scalar_select %p46_p9, %s1652_s14, %s48_s6  }
  0x1c   : > { %s203_s26 = scalar_lea.hbm %s1984_s0, %s1372_s19  ;;  %s195_s28 = scalar_lea.vmem [#allocation3], %s1166_s11 }
  0x1d   : > { %s206_s29 = sshll.u32 %s195_s28, 4  ;;  %s204_s21 = sshll.u32 %s203_s26, 4  ;;  %s207_s29 = int_to_ptr.vmem [resolvable:$true] %s206_s29  ;;  %s205_s21 = int_to_ptr.hbm [resolvable:$true] %s204_s21 }
  0x1e   : > { %p1451_p2 = pnand %p1459_p7, %p1766_p3  ;;  %s192_s30 = scalar_lea.sflag [#allocation4], %s191_s10 }
  0x1f   : > { %s1669_s4 = smov 128   ;;  %s1670_s1 = smov 8  }
  0x20   : > { %1453 = dma.hbm_to_vmem [thread:$0]  (!%p1451_p2), %s205_s21, 4096, %s207_s29, %s192_s30, %s1669_s4, %s1669_s4, %s1670_s1  }
  0x21   : > { %218 = sbr.rel (%p1750_p8) target bundleno = 336 (0x150), region = 32  ;;  %s1792_s6 = sand.u32 (!%p1750_p8), 1, %s1648_s13  }
  0x22   : > { %s1171_s9 = sshll.u32 (!%p1750_p8), %s1792_s6, 8  ;;  %s221_s11 = scalar_lea.sflag (!%p1750_p8), [#allocation4], %s1792_s6 }
  0x23   : > { %s1798_s19 = scalar_lea.vmem (!%p1750_p8), [#allocation3], %s1171_s9 }
  0x26   : > { %1631 = dma.done.wait (%p1737_p4), %s221_s11, 4096  }
  0x27   : > { %1633 = vsyncadd (%p1737_p4), %s221_s11, 4294963200 }
  0x28   : > { %1635 = dma.done.wait (%p1727_p1), [#allocation7], 2048  }
  0x29   : > { %1637 = vsyncadd (%p1727_p1), [#allocation7], 4294965248  ;;  %v1412_v0 = vld [vmem:[#allocation6 + $0x38] sm:$0xff]  ;;  %v1411_v2 = vld [vmem:[#allocation6 + $0x30] sm:$0xff]  ;;  %s1880_s22 = scalar_lea.vmem [#allocation8], %s1171_s9  ;;  %s1421_s27 = sshll.u32 %s1656_s15, 8 }
  0x2a   : > { %v1420_v1 = vld [vmem:[#allocation6 + $0x78] sm:$0xff]  ;;  %651 = vmatpush.bf16.msra.mxu0 %v1412_v0  ;;  %1422 = vmatpush.bf16.msra.mxu2 %v1412_v0  ;;  %v1419_v3 = vld [vmem:[#allocation6 + $0x70] sm:$0xff]  ;;  %v1410_v4 = vld [vmem:[#allocation6 + $0x28] sm:$0xff]  ;;  %s1041_s24 = scalar_lea.hbm %s1987_s3, %s1421_s27  ;;  %s1042_s25 = sshll.u32 %s1880_s22, 4  ;;  %s1043_s25 = int_to_ptr.vmem [resolvable:$true] %s1042_s25 }
  0x2b   : > { %740 = vmatpush.bf16.msra.mxu1 %v1420_v1  ;;  %1430 = vmatpush.bf16.msra.mxu3 %v1420_v1  ;;  %v1418_v5 = vld [vmem:[#allocation6 + $0x68] sm:$0xff]  ;;  %v1409_v6 = vld [vmem:[#allocation6 + $0x20] sm:$0xff]  ;;  %v1408_v8 = vld [vmem:[#allocation6 + $0x18] sm:$0xff]  ;;  %s1044_s26 = sshll.u32 %s1041_s24, 4  ;;  %s1029_s15 = scalar_lea.sflag [#allocation5], %s1792_s6  ;;  %s1045_s26 = int_to_ptr.hbm [resolvable:$true] %s1044_s26 }
  0x2c   : > { %v1417_v7 = vld [vmem:[#allocation6 + $0x60] sm:$0xff]  ;;  %v1416_v9 = vld [vmem:[#allocation6 + $0x58] sm:$0xff]  ;;  %v1407_v10 = vld [vmem:[#allocation6 + $0x10] sm:$0xff]  ;;  %s1592_s28 = sshra.s32 %s1045_s26, 4  ;;  %s1598_s4 = scalar_lea.hbm %s1987_s3, 512  ;;  %s1593_s28 = int_to_ptr.hbm [resolvable:$true] %s1592_s28 }
  0x2d   : > { %v1415_v11 = vld [vmem:[#allocation6 + $0x50] sm:$0xff]  ;;  %v1406_v12 = vld [vmem:[#allocation6 + $0x8] sm:$0xff]  ;;  %v1405_v14 = vld [vmem:[#allocation6] sm:$0xff]  ;;  %s1594_s29 = scalar_lea.hbm %s1593_s28, 256  ;;  %p1599_p10 = scmp.lt.s32.totalorder %s1593_s28, %s1987_s3 }
  0x2e   : > { %652 = vmatpush.bf16.msra.mxu0 %v1411_v2  ;;  %1423 = vmatpush.bf16.msra.mxu2 %v1411_v2  ;;  %v1414_v13 = vld [vmem:[#allocation6 + $0x48] sm:$0xff]  ;;  %v1413_v15 = vld [vmem:[#allocation6 + $0x40] sm:$0xff]  ;;  %v1184_v28 = vld [vmem:[%s1798_s19 + $0x10] sm:$0xf]  ;;  %p1595_p1 = scmp.ne.s32.totalorder %s1593_s28, %s1594_s29  ;;  %p1600_p12 = scmp.lt.s32.totalorder %s1598_s4, %s1594_s29 }
  0x2f   : > { %741 = vmatpush.bf16.msra.mxu1 %v1419_v3  ;;  %1431 = vmatpush.bf16.msra.mxu3 %v1419_v3  ;;  %v1176_v16 = vld [vmem:[%s1798_s19] sm:$0xf]  ;;  %v1374_v17 = vld [vmem:[%s1798_s19 + $0x4] sm:$0xf0]  ;;  %v1373_v20 = vld [vmem:[%s1798_s19 + $0x4] sm:$0xf] }
  0x30   : > { %v1240_v18 = vld [vmem:[%s1798_s19 + $0x80] sm:$0xf]  ;;  %v1390_v19 = vld [vmem:[%s1798_s19 + $0x84] sm:$0xf0]  ;;  %v1178_v21 = vld [vmem:[%s1798_s19 + $0x8] sm:$0xf0]  ;;  %v1177_v24 = vor.u32 %v1374_v17, %v1176_v16  ;;  %p1596_p4 = pnand %p1595_p1, %p1772_p5  ;;  %p1601_p13 = por %p1600_p12, %p1599_p10 }
  0x31   : > { %v1389_v22 = vld [vmem:[%s1798_s19 + $0x84] sm:$0xf]  ;;  %v1242_v23 = vld [vmem:[%s1798_s19 + $0x88] sm:$0xf0]  ;;  %v1241_v25 = vor.u32 %v1390_v19, %v1240_v18  ;;  %v1181_v26 = vor.u32 %v1373_v20, %v1178_v21  ;;  %v1376_v29 = vld [vmem:[%s1798_s19 + $0x14] sm:$0xf0] }
  0x32   : > { %653 = vmatpush.bf16.msra.mxu0 %v1410_v4  ;;  %1424 = vmatpush.bf16.msra.mxu2 %v1410_v4  ;;  %v1245_v27 = vor.u32 %v1389_v22, %v1242_v23  ;;  %v1248_v30 = vld [vmem:[%s1798_s19 + $0x90] sm:$0xf]  ;;  %v1392_v31 = vld [vmem:[%s1798_s19 + $0x94] sm:$0xf0]  ;;  %v1375_v32 = vld [vmem:[%s1798_s19 + $0x14] sm:$0xf]  ;;  %v1185_v36 = vor.u32 %v1376_v29, %v1184_v28  ;;  %p1597_p8 = pneg %p1596_p4 }
  0x33   : > { %742 = vmatpush.bf16.msra.mxu1 %v1418_v5  ;;  %1432 = vmatpush.bf16.msra.mxu3 %v1418_v5  ;;  %v1186_v33 = vld [vmem:[%s1798_s19 + $0x18] sm:$0xf0]  ;;  %v1391_v34 = vld [vmem:[%s1798_s19 + $0x94] sm:$0xf]  ;;  %v1249_v37 = vor.u32 %v1392_v31, %v1248_v30  ;;  %v1192_v40 = vld [vmem:[%s1798_s19 + $0x20] sm:$0xf] }
  0x34   : > { %v1250_v35 = vld [vmem:[%s1798_s19 + $0x98] sm:$0xf0]  ;;  %v1189_v38 = vor.u32 %v1375_v32, %v1186_v33  ;;  %v1378_v41 = vld [vmem:[%s1798_s19 + $0x24] sm:$0xf0]  ;;  %v1256_v42 = vld [vmem:[%s1798_s19 + $0xa0] sm:$0xf]  ;;  %p1602_p0 = pnand %p1601_p13, %p1597_p8 }
  0x35   : > { %v1253_v39 = vor.u32 %v1391_v34, %v1250_v35  ;;  %v1394_v43 = vld [vmem:[%s1798_s19 + $0xa4] sm:$0xf0]  ;;  %v1377_v44 = vld [vmem:[%s1798_s19 + $0x24] sm:$0xf]  ;;  %v1194_v45 = vld [vmem:[%s1798_s19 + $0x28] sm:$0xf0]  ;;  %v1193_v48 = vor.u32 %v1378_v41, %v1192_v40 }
  0x36   : > { %654 = vmatpush.bf16.msra.mxu0 %v1409_v6  ;;  %1425 = vmatpush.bf16.msra.mxu2 %v1409_v6  ;;  %v1393_v46 = vld [vmem:[%s1798_s19 + $0xa4] sm:$0xf]  ;;  %v1258_v47 = vld [vmem:[%s1798_s19 + $0xa8] sm:$0xf0]  ;;  %v1257_v49 = vor.u32 %v1394_v43, %v1256_v42  ;;  %v1197_v50 = vor.u32 %v1377_v44, %v1194_v45  ;;  %v1200_v52 = vld [vmem:[%s1798_s19 + $0x30] sm:$0xf] }
  0x37   : > { %743 = vmatpush.bf16.msra.mxu1 %v1417_v7  ;;  %1433 = vmatpush.bf16.msra.mxu3 %v1417_v7  ;;  %v1261_v51 = vor.u32 %v1393_v46, %v1258_v47  ;;  %v1380_v53 = vld [vmem:[%s1798_s19 + $0x34] sm:$0xf0]  ;;  %v1264_v54 = vld [vmem:[%s1798_s19 + $0xb0] sm:$0xf]  ;;  %v1379_v56 = vld [vmem:[%s1798_s19 + $0x34] sm:$0xf] }
  0x38   : > { %v1396_v55 = vld [vmem:[%s1798_s19 + $0xb4] sm:$0xf0]  ;;  %v1202_v57 = vld [vmem:[%s1798_s19 + $0x38] sm:$0xf0]  ;;  %v1395_v58 = vld [vmem:[%s1798_s19 + $0xb4] sm:$0xf]  ;;  %v1201_v60 = vor.u32 %v1380_v53, %v1200_v52 }
  0x39   : > { %v1266_v59 = vld [vmem:[%s1798_s19 + $0xb8] sm:$0xf0]  ;;  %v1265_v61 = vor.u32 %v1396_v55, %v1264_v54  ;;  %v1205_v62 = vor.u32 %v1379_v56, %v1202_v57  ;;  %v1208_v0 = vld [vmem:[%s1798_s19 + $0x40] sm:$0xf]  ;;  %v1382_v1 = vld [vmem:[%s1798_s19 + $0x44] sm:$0xf0] }
  0x3a   : > { %655 = vmatpush.bf16.msra.mxu0 %v1408_v8  ;;  %1426 = vmatpush.bf16.msra.mxu2 %v1408_v8  ;;  %v1269_v63 = vor.u32 %v1395_v58, %v1266_v59  ;;  %v1272_v2 = vld [vmem:[%s1798_s19 + $0xc0] sm:$0xf]  ;;  %v1398_v3 = vld [vmem:[%s1798_s19 + $0xc4] sm:$0xf0]  ;;  %v1381_v4 = vld [vmem:[%s1798_s19 + $0x44] sm:$0xf]  ;;  %v1209_v8 = vor.u32 %v1382_v1, %v1208_v0 }
  0x3b   : > { %744 = vmatpush.bf16.msra.mxu1 %v1416_v9  ;;  %1434 = vmatpush.bf16.msra.mxu3 %v1416_v9  ;;  %v1210_v5 = vld [vmem:[%s1798_s19 + $0x48] sm:$0xf0]  ;;  %v1397_v6 = vld [vmem:[%s1798_s19 + $0xc4] sm:$0xf]  ;;  %v1273_v9 = vor.u32 %v1398_v3, %v1272_v2  ;;  %v1383_v16 = vld [vmem:[%s1798_s19 + $0x54] sm:$0xf] }
  0x3c   : > { %v1274_v7 = vld [vmem:[%s1798_s19 + $0xc8] sm:$0xf0]  ;;  %v1218_v17 = vld [vmem:[%s1798_s19 + $0x58] sm:$0xf0]  ;;  %v1399_v18 = vld [vmem:[%s1798_s19 + $0xd4] sm:$0xf] }
  0x3d   : > { %v1282_v19 = vld [vmem:[%s1798_s19 + $0xd8] sm:$0xf0]  ;;  %v1221_v22 = vor.u32 %v1383_v16, %v1218_v17  ;;  %v1385_v28 = vld [vmem:[%s1798_s19 + $0x64] sm:$0xf]  ;;  %v1226_v29 = vld [vmem:[%s1798_s19 + $0x68] sm:$0xf0] }
  0x3e   : > { %656 = vmatpush.bf16.msra.mxu0 %v1407_v10  ;;  %1427 = vmatpush.bf16.msra.mxu2 %v1407_v10  ;;  %v1213_v10 = vor.u32 %v1381_v4, %v1210_v5  ;;  %v1285_v23 = vor.u32 %v1399_v18, %v1282_v19  ;;  %v1401_v30 = vld [vmem:[%s1798_s19 + $0xe4] sm:$0xf]  ;;  %v1290_v31 = vld [vmem:[%s1798_s19 + $0xe8] sm:$0xf0]  ;;  %v1229_v34 = vor.u32 %v1385_v28, %v1226_v29  ;;  %v1387_v40 = vld [vmem:[%s1798_s19 + $0x74] sm:$0xf] }
  0x3f   : > { %745 = vmatpush.bf16.msra.mxu1 %v1415_v11  ;;  %1435 = vmatpush.bf16.msra.mxu3 %v1415_v11  ;;  %v1277_v11 = vor.u32 %v1397_v6, %v1274_v7  ;;  %v1293_v35 = vor.u32 %v1401_v30, %v1290_v31  ;;  %v1234_v41 = vld [vmem:[%s1798_s19 + $0x78] sm:$0xf0]  ;;  %v1403_v42 = vld [vmem:[%s1798_s19 + $0xf4] sm:$0xf] }
  0x40   : > { %v1298_v43 = vld [vmem:[%s1798_s19 + $0xf8] sm:$0xf0]  ;;  %v1237_v46 = vor.u32 %v1387_v40, %v1234_v41 }
  0x41   : > { %v1301_v47 = vor.u32 %v1403_v42, %v1298_v43 }
  0x42   : > { %657 = vmatpush.bf16.msra.mxu0 %v1406_v12  ;;  %1428 = vmatpush.bf16.msra.mxu2 %v1406_v12  ;;  %v1216_v12 = vld [vmem:[%s1798_s19 + $0x50] sm:$0xf] }
  0x43   : > { %746 = vmatpush.bf16.msra.mxu1 %v1414_v13  ;;  %1436 = vmatpush.bf16.msra.mxu3 %v1414_v13  ;;  %v1384_v13 = vld [vmem:[%s1798_s19 + $0x54] sm:$0xf0] }
  0x44   : > { %v1217_v20 = vor.u32 %v1384_v13, %v1216_v12 }
  0x46   : > { %658 = vmatpush.bf16.msra.mxu0 %v1405_v14  ;;  %1429 = vmatpush.bf16.msra.mxu2 %v1405_v14  ;;  %v1280_v14 = vld [vmem:[%s1798_s19 + $0xd0] sm:$0xf] }
  0x47   : > { %747 = vmatpush.bf16.msra.mxu1 %v1413_v15  ;;  %1437 = vmatpush.bf16.msra.mxu3 %v1413_v15  ;;  %v1400_v15 = vld [vmem:[%s1798_s19 + $0xd4] sm:$0xf0] }
  0x48   : > { %v1281_v21 = vor.u32 %v1400_v15, %v1280_v14 }
  0x49   : > { %659 = vmatmul.bf16.vlgmr.msra.gmra.mxu0 %v1177_v24  ;;  %699 = vmatmul.bf16.vlgmr.msra.gmra.mxu2 %v1241_v25  ;;  %v1224_v24 = vld [vmem:[%s1798_s19 + $0x60] sm:$0xf]  ;;  %v1386_v25 = vld [vmem:[%s1798_s19 + $0x64] sm:$0xf0] }
  0x4a   : > { %748 = vmatmul.bf16.vlgmr.msra.gmra.mxu1 %v1181_v26  ;;  %788 = vmatmul.bf16.vlgmr.msra.gmra.mxu3 %v1245_v27  ;;  %v1288_v26 = vld [vmem:[%s1798_s19 + $0xe0] sm:$0xf]  ;;  %v1402_v27 = vld [vmem:[%s1798_s19 + $0xe4] sm:$0xf0]  ;;  %v1225_v32 = vor.u32 %v1386_v25, %v1224_v24 }
  0x4b   : > { %v1289_v33 = vor.u32 %v1402_v27, %v1288_v26 }
  0x59   : > { %664 = vmatmul.bf16.gmra.mxu0 %v1185_v36  ;;  %704 = vmatmul.bf16.gmra.mxu2 %v1249_v37  ;;  %v1232_v36 = vld [vmem:[%s1798_s19 + $0x70] sm:$0xf]  ;;  %v1388_v37 = vld [vmem:[%s1798_s19 + $0x74] sm:$0xf0] }
  0x5a   : > { %753 = vmatmul.bf16.gmra.mxu1 %v1189_v38  ;;  %793 = vmatmul.bf16.gmra.mxu3 %v1253_v39  ;;  %v1296_v38 = vld [vmem:[%s1798_s19 + $0xf0] sm:$0xf]  ;;  %v1404_v39 = vld [vmem:[%s1798_s19 + $0xf4] sm:$0xf0]  ;;  %v1233_v44 = vor.u32 %v1388_v37, %v1232_v36 }
  0x5b   : > { %v1297_v45 = vor.u32 %v1404_v39, %v1296_v38 }
  0x69   : > { %669 = vmatmul.bf16.gmra.mxu0 %v1193_v48  ;;  %709 = vmatmul.bf16.gmra.mxu2 %v1257_v49  ;;  %v1875_v49 = vld [vmem:[%s1986_s2] ss:$0 sm:$0xff] }
  0x6a   : > { %758 = vmatmul.bf16.gmra.mxu1 %v1197_v50  ;;  %798 = vmatmul.bf16.gmra.mxu3 %v1261_v51 }
  0x79   : > { %674 = vmatmul.bf16.gmra.mxu0 %v1201_v60  ;;  %714 = vmatmul.bf16.gmra.mxu2 %v1265_v61 }
  0x7a   : > { %763 = vmatmul.bf16.gmra.mxu1 %v1205_v62  ;;  %803 = vmatmul.bf16.gmra.mxu3 %v1269_v63 }
  0x89   : > { %679 = vmatmul.bf16.gmra.mxu0 %v1209_v8  ;;  %719 = vmatmul.bf16.gmra.mxu2 %v1273_v9 }
  0x8a   : > { %768 = vmatmul.bf16.gmra.mxu1 %v1213_v10  ;;  %808 = vmatmul.bf16.gmra.mxu3 %v1277_v11 }
  0x99   : > { %684 = vmatmul.bf16.gmra.mxu0 %v1217_v20  ;;  %724 = vmatmul.bf16.gmra.mxu2 %v1281_v21 }
  0x9a   : > { %773 = vmatmul.bf16.gmra.mxu1 %v1221_v22  ;;  %813 = vmatmul.bf16.gmra.mxu3 %v1285_v23 }
  0xa9   : > { %689 = vmatmul.bf16.gmra.mxu0 %v1225_v32  ;;  %729 = vmatmul.bf16.gmra.mxu2 %v1289_v33 }
  0xaa   : > { %778 = vmatmul.bf16.gmra.mxu1 %v1229_v34  ;;  %818 = vmatmul.bf16.gmra.mxu3 %v1293_v35 }
  0xb9   : > { %694 = vmatmul.bf16.gmra.mxu0 %v1233_v44  ;;  %734 = vmatmul.bf16.gmra.mxu2 %v1297_v45 }
  0xba   : > { %783 = vmatmul.bf16.gmra.mxu1 %v1237_v46  ;;  %823 = vmatmul.bf16.gmra.mxu3 %v1301_v47 }
  0xc6   : > { %v660_v48 = vpop.f32.mrf.mxu0 }
  0xc7   : > { %v749_v50 = vpop.f32.mrf.mxu1 }
  0xc8   : > { %v750_v51 = vadd.f32 %v749_v50, %v660_v48 }
  0xca   : > { %v932_v52 = vadd.f32 %v1875_v49, %v750_v51 }
  0xcc   : > { %v964_v53 = vmax.f32 %v932_v52, 0.0  ;;  %v700_v54 = vpop.f32.mrf.mxu2 }
  0xcd   : > { %v789_v55 = vpop.f32.mrf.mxu3 }
  0xce   : > { %996 = vst [vmem:[%s1880_s22] sm:$0xff] %v964_v53  ;;  %v790_v56 = vadd.f32 %v789_v55, %v700_v54  ;;  %v662_v57 = vpop.f32.mrf.mxu0 }
  0xcf   : > { %v751_v58 = vpop.f32.mrf.mxu1 }
  0xd0   : > { %v948_v59 = vadd.f32 %v1875_v49, %v790_v56  ;;  %v752_v60 = vadd.f32 %v751_v58, %v662_v57 }
  0xd2   : > { %v980_v61 = vmax.f32 %v948_v59, 0.0  ;;  %v933_v62 = vadd.f32 %v1875_v49, %v752_v60 }
  0xd4   : > { %1012 = vst [vmem:[%s1880_s22 + $0x80] sm:$0xff] %v980_v61  ;;  %v965_v63 = vmax.f32 %v933_v62, 0.0  ;;  %v702_v0 = vpop.f32.mrf.mxu2 }
  0xd5   : > { %v791_v1 = vpop.f32.mrf.mxu3 }
  0xd6   : > { %997 = vst [vmem:[%s1880_s22 + $0x8] sm:$0xff] %v965_v63  ;;  %v792_v2 = vadd.f32 %v791_v1, %v702_v0  ;;  %v665_v3 = vpop.f32.mrf.mxu0 }
  0xd7   : > { %v754_v4 = vpop.f32.mrf.mxu1 }
  0xd8   : > { %v949_v5 = vadd.f32 %v1875_v49, %v792_v2  ;;  %v755_v6 = vadd.f32 %v754_v4, %v665_v3 }
  0xda   : > { %v981_v7 = vmax.f32 %v949_v5, 0.0  ;;  %v934_v8 = vadd.f32 %v1875_v49, %v755_v6 }
  0xdc   : > { %1013 = vst [vmem:[%s1880_s22 + $0x88] sm:$0xff] %v981_v7  ;;  %v966_v9 = vmax.f32 %v934_v8, 0.0  ;;  %v705_v10 = vpop.f32.mrf.mxu2 }
  0xdd   : > { %v794_v11 = vpop.f32.mrf.mxu3 }
  0xde   : > { %998 = vst [vmem:[%s1880_s22 + $0x10] sm:$0xff] %v966_v9  ;;  %v795_v12 = vadd.f32 %v794_v11, %v705_v10  ;;  %v667_v13 = vpop.f32.mrf.mxu0 }
  0xdf   : > { %v756_v14 = vpop.f32.mrf.mxu1 }
  0xe0   : > { %v950_v15 = vadd.f32 %v1875_v49, %v795_v12  ;;  %v757_v16 = vadd.f32 %v756_v14, %v667_v13 }
  0xe2   : > { %v982_v17 = vmax.f32 %v950_v15, 0.0  ;;  %v935_v18 = vadd.f32 %v1875_v49, %v757_v16 }
  0xe4   : > { %1014 = vst [vmem:[%s1880_s22 + $0x90] sm:$0xff] %v982_v17  ;;  %v967_v19 = vmax.f32 %v935_v18, 0.0  ;;  %v707_v20 = vpop.f32.mrf.mxu2 }
  0xe5   : > { %v796_v21 = vpop.f32.mrf.mxu3 }
  0xe6   : > { %999 = vst [vmem:[%s1880_s22 + $0x18] sm:$0xff] %v967_v19  ;;  %v797_v22 = vadd.f32 %v796_v21, %v707_v20  ;;  %v670_v23 = vpop.f32.mrf.mxu0 }
  0xe7   : > { %v759_v24 = vpop.f32.mrf.mxu1 }
  0xe8   : > { %v951_v25 = vadd.f32 %v1875_v49, %v797_v22  ;;  %v760_v26 = vadd.f32 %v759_v24, %v670_v23 }
  0xea   : > { %v983_v27 = vmax.f32 %v951_v25, 0.0  ;;  %v936_v28 = vadd.f32 %v1875_v49, %v760_v26 }
  0xec   : > { %1015 = vst [vmem:[%s1880_s22 + $0x98] sm:$0xff] %v983_v27  ;;  %v968_v29 = vmax.f32 %v936_v28, 0.0  ;;  %v710_v30 = vpop.f32.mrf.mxu2 }
  0xed   : > { %v799_v31 = vpop.f32.mrf.mxu3 }
  0xee   : > { %1000 = vst [vmem:[%s1880_s22 + $0x20] sm:$0xff] %v968_v29  ;;  %v800_v32 = vadd.f32 %v799_v31, %v710_v30  ;;  %v672_v33 = vpop.f32.mrf.mxu0 }
  0xef   : > { %v761_v34 = vpop.f32.mrf.mxu1 }
  0xf0   : > { %v952_v35 = vadd.f32 %v1875_v49, %v800_v32  ;;  %v762_v36 = vadd.f32 %v761_v34, %v672_v33 }
  0xf2   : > { %v984_v37 = vmax.f32 %v952_v35, 0.0  ;;  %v937_v38 = vadd.f32 %v1875_v49, %v762_v36 }
  0xf4   : > { %1016 = vst [vmem:[%s1880_s22 + $0xa0] sm:$0xff] %v984_v37  ;;  %v969_v39 = vmax.f32 %v937_v38, 0.0  ;;  %v712_v40 = vpop.f32.mrf.mxu2 }
  0xf5   : > { %v801_v41 = vpop.f32.mrf.mxu3 }
  0xf6   : > { %1001 = vst [vmem:[%s1880_s22 + $0x28] sm:$0xff] %v969_v39  ;;  %v802_v42 = vadd.f32 %v801_v41, %v712_v40  ;;  %v675_v43 = vpop.f32.mrf.mxu0 }
  0xf7   : > { %v764_v44 = vpop.f32.mrf.mxu1 }
  0xf8   : > { %v953_v45 = vadd.f32 %v1875_v49, %v802_v42  ;;  %v765_v46 = vadd.f32 %v764_v44, %v675_v43 }
  0xfa   : > { %v985_v47 = vmax.f32 %v953_v45, 0.0  ;;  %v938_v48 = vadd.f32 %v1875_v49, %v765_v46 }
  0xfc   : > { %1017 = vst [vmem:[%s1880_s22 + $0xa8] sm:$0xff] %v985_v47  ;;  %v970_v50 = vmax.f32 %v938_v48, 0.0  ;;  %v715_v51 = vpop.f32.mrf.mxu2 }
  0xfd   : > { %v804_v52 = vpop.f32.mrf.mxu3 }
  0xfe   : > { %1002 = vst [vmem:[%s1880_s22 + $0x30] sm:$0xff] %v970_v50  ;;  %v805_v53 = vadd.f32 %v804_v52, %v715_v51  ;;  %v677_v54 = vpop.f32.mrf.mxu0 }
  0xff   : > { %v766_v55 = vpop.f32.mrf.mxu1 }
 0x100   : > { %v954_v56 = vadd.f32 %v1875_v49, %v805_v53  ;;  %v767_v57 = vadd.f32 %v766_v55, %v677_v54 }
 0x102   : > { %v986_v58 = vmax.f32 %v954_v56, 0.0  ;;  %v939_v59 = vadd.f32 %v1875_v49, %v767_v57 }
 0x104   : > { %1018 = vst [vmem:[%s1880_s22 + $0xb0] sm:$0xff] %v986_v58  ;;  %v971_v60 = vmax.f32 %v939_v59, 0.0  ;;  %v717_v61 = vpop.f32.mrf.mxu2 }
 0x105   : > { %v806_v62 = vpop.f32.mrf.mxu3 }
 0x106   : > { %1003 = vst [vmem:[%s1880_s22 + $0x38] sm:$0xff] %v971_v60  ;;  %v807_v63 = vadd.f32 %v806_v62, %v717_v61  ;;  %v680_v0 = vpop.f32.mrf.mxu0 }
 0x107   : > { %v769_v1 = vpop.f32.mrf.mxu1 }
 0x108   : > { %v955_v2 = vadd.f32 %v1875_v49, %v807_v63  ;;  %v770_v3 = vadd.f32 %v769_v1, %v680_v0 }
 0x10a   : > { %v987_v4 = vmax.f32 %v955_v2, 0.0  ;;  %v940_v5 = vadd.f32 %v1875_v49, %v770_v3 }
 0x10c   : > { %1019 = vst [vmem:[%s1880_s22 + $0xb8] sm:$0xff] %v987_v4  ;;  %v972_v6 = vmax.f32 %v940_v5, 0.0  ;;  %v720_v7 = vpop.f32.mrf.mxu2 }
 0x10d   : > { %v809_v8 = vpop.f32.mrf.mxu3 }
 0x10e   : > { %1004 = vst [vmem:[%s1880_s22 + $0x40] sm:$0xff] %v972_v6  ;;  %v810_v9 = vadd.f32 %v809_v8, %v720_v7  ;;  %v682_v10 = vpop.f32.mrf.mxu0 }
 0x10f   : > { %v771_v11 = vpop.f32.mrf.mxu1 }
 0x110   : > { %v956_v12 = vadd.f32 %v1875_v49, %v810_v9  ;;  %v772_v13 = vadd.f32 %v771_v11, %v682_v10 }
 0x112   : > { %v988_v14 = vmax.f32 %v956_v12, 0.0  ;;  %v941_v15 = vadd.f32 %v1875_v49, %v772_v13 }
 0x114   : > { %1020 = vst [vmem:[%s1880_s22 + $0xc0] sm:$0xff] %v988_v14  ;;  %v973_v16 = vmax.f32 %v941_v15, 0.0  ;;  %v722_v17 = vpop.f32.mrf.mxu2 }
 0x115   : > { %v811_v18 = vpop.f32.mrf.mxu3 }
 0x116   : > { %1005 = vst [vmem:[%s1880_s22 + $0x48] sm:$0xff] %v973_v16  ;;  %v812_v19 = vadd.f32 %v811_v18, %v722_v17  ;;  %v685_v20 = vpop.f32.mrf.mxu0 }
 0x117   : > { %v774_v21 = vpop.f32.mrf.mxu1 }
 0x118   : > { %v957_v22 = vadd.f32 %v1875_v49, %v812_v19  ;;  %v775_v23 = vadd.f32 %v774_v21, %v685_v20 }
 0x11a   : > { %v989_v24 = vmax.f32 %v957_v22, 0.0  ;;  %v942_v25 = vadd.f32 %v1875_v49, %v775_v23 }
 0x11c   : > { %1021 = vst [vmem:[%s1880_s22 + $0xc8] sm:$0xff] %v989_v24  ;;  %v974_v26 = vmax.f32 %v942_v25, 0.0  ;;  %v725_v27 = vpop.f32.mrf.mxu2 }
 0x11d   : > { %v814_v28 = vpop.f32.mrf.mxu3 }
 0x11e   : > { %1006 = vst [vmem:[%s1880_s22 + $0x50] sm:$0xff] %v974_v26  ;;  %v815_v29 = vadd.f32 %v814_v28, %v725_v27  ;;  %v687_v30 = vpop.f32.mrf.mxu0 }
 0x11f   : > { %v776_v31 = vpop.f32.mrf.mxu1 }
 0x120   : > { %v958_v32 = vadd.f32 %v1875_v49, %v815_v29  ;;  %v777_v33 = vadd.f32 %v776_v31, %v687_v30 }
 0x122   : > { %v990_v34 = vmax.f32 %v958_v32, 0.0  ;;  %v943_v35 = vadd.f32 %v1875_v49, %v777_v33 }
 0x124   : > { %1022 = vst [vmem:[%s1880_s22 + $0xd0] sm:$0xff] %v990_v34  ;;  %v975_v36 = vmax.f32 %v943_v35, 0.0  ;;  %v727_v37 = vpop.f32.mrf.mxu2 }
 0x125   : > { %v816_v38 = vpop.f32.mrf.mxu3 }
 0x126   : > { %1007 = vst [vmem:[%s1880_s22 + $0x58] sm:$0xff] %v975_v36  ;;  %v817_v39 = vadd.f32 %v816_v38, %v727_v37  ;;  %v690_v40 = vpop.f32.mrf.mxu0 }
 0x127   : > { %v779_v41 = vpop.f32.mrf.mxu1 }
 0x128   : > { %v959_v42 = vadd.f32 %v1875_v49, %v817_v39  ;;  %v780_v43 = vadd.f32 %v779_v41, %v690_v40 }
 0x12a   : > { %v991_v44 = vmax.f32 %v959_v42, 0.0  ;;  %v944_v45 = vadd.f32 %v1875_v49, %v780_v43 }
 0x12c   : > { %1023 = vst [vmem:[%s1880_s22 + $0xd8] sm:$0xff] %v991_v44  ;;  %v976_v46 = vmax.f32 %v944_v45, 0.0  ;;  %v730_v47 = vpop.f32.mrf.mxu2 }
 0x12d   : > { %v819_v48 = vpop.f32.mrf.mxu3 }
 0x12e   : > { %1008 = vst [vmem:[%s1880_s22 + $0x60] sm:$0xff] %v976_v46  ;;  %v820_v50 = vadd.f32 %v819_v48, %v730_v47  ;;  %v692_v51 = vpop.f32.mrf.mxu0 }
 0x12f   : > { %v781_v52 = vpop.f32.mrf.mxu1 }
 0x130   : > { %v960_v53 = vadd.f32 %v1875_v49, %v820_v50  ;;  %v782_v54 = vadd.f32 %v781_v52, %v692_v51 }
 0x132   : > { %v992_v55 = vmax.f32 %v960_v53, 0.0  ;;  %v945_v56 = vadd.f32 %v1875_v49, %v782_v54 }
 0x134   : > { %1024 = vst [vmem:[%s1880_s22 + $0xe0] sm:$0xff] %v992_v55  ;;  %v977_v57 = vmax.f32 %v945_v56, 0.0  ;;  %v732_v58 = vpop.f32.mrf.mxu2 }
 0x135   : > { %v821_v59 = vpop.f32.mrf.mxu3 }
 0x136   : > { %1009 = vst [vmem:[%s1880_s22 + $0x68] sm:$0xff] %v977_v57  ;;  %v822_v60 = vadd.f32 %v821_v59, %v732_v58  ;;  %v695_v61 = vpop.f32.mrf.mxu0 }
 0x137   : > { %v784_v62 = vpop.f32.mrf.mxu1 }
 0x138   : > { %v961_v63 = vadd.f32 %v1875_v49, %v822_v60  ;;  %v785_v0 = vadd.f32 %v784_v62, %v695_v61 }
 0x13a   : > { %v993_v1 = vmax.f32 %v961_v63, 0.0  ;;  %v946_v2 = vadd.f32 %v1875_v49, %v785_v0 }
 0x13c   : > { %1025 = vst [vmem:[%s1880_s22 + $0xe8] sm:$0xff] %v993_v1  ;;  %v978_v3 = vmax.f32 %v946_v2, 0.0  ;;  %v735_v4 = vpop.f32.mrf.mxu2 }
 0x13d   : > { %v824_v5 = vpop.f32.mrf.mxu3 }
 0x13e   : > { %1010 = vst [vmem:[%s1880_s22 + $0x70] sm:$0xff] %v978_v3  ;;  %v825_v6 = vadd.f32 %v824_v5, %v735_v4  ;;  %v697_v7 = vpop.f32.mrf.mxu0 }
 0x13f   : > { %v786_v8 = vpop.f32.mrf.mxu1 }
 0x140   : > { %v962_v9 = vadd.f32 %v1875_v49, %v825_v6  ;;  %v787_v10 = vadd.f32 %v786_v8, %v697_v7 }
 0x142   : > { %v994_v11 = vmax.f32 %v962_v9, 0.0  ;;  %v947_v12 = vadd.f32 %v1875_v49, %v787_v10 }
 0x144   : > { %1026 = vst [vmem:[%s1880_s22 + $0xf0] sm:$0xff] %v994_v11  ;;  %v979_v13 = vmax.f32 %v947_v12, 0.0  ;;  %v737_v14 = vpop.f32.mrf.mxu2 }
 0x145   : > { %v826_v15 = vpop.f32.mrf.mxu3 }
 0x146   : > { %1011 = vst [vmem:[%s1880_s22 + $0x78] sm:$0xff] %v979_v13  ;;  %v827_v16 = vadd.f32 %v826_v15, %v737_v14 }
 0x148   : > { %v963_v17 = vadd.f32 %v1875_v49, %v827_v16 }
 0x14a   : > { %v995_v18 = vmax.f32 %v963_v17, 0.0 }
 0x14c   : > { %1027 = vst [vmem:[%s1880_s22 + $0xf8] sm:$0xff] %v995_v18 }
 0x14d   : > { %1605 = shalt.err (!%p1602_p0)
}
 0x14e   : > { %s1671_s6 = smov 128   ;;  %s1672_s19 = smov 8  }
 0x14f   : > { %1444 = dma.vmem_to_hbm [thread:$0]  (%p1772_p5), %s1043_s25, 4096, %s1045_s26, %s1029_s15, %s1671_s6, %s1671_s6, %s1672_s19  }
 0x150 PF: > { %s1059_s1 = sand.u32 1, %s1644_s12   ;;  %p1455_p3 = pnand %p1165_p11, %p1742_p6 }
 0x151   : > { %s1060_s20 = scalar_lea.sflag [#allocation5], %s1059_s1 }
 0x152   : > { %p1456_p7 = pneg %p1455_p3 }
 0x154   : > { %1639 = dma.done.wait (%p1456_p7), %s1060_s20, 4096  }
 0x155   : > { %1641 = vsyncadd (%p1456_p7), %s1060_s20, 4294963200  ;;  %s20_s17 = sadd.s32 1, %s1664_s17   ;;  %s1997_s12 = smov %s1648_s13 }
 0x156   : > { %p17_p9 = scmp.ge.s32.totalorder %s20_s17, 4   ;;  %s1998_s13 = smov %s1652_s14 }
 0x157   : > { %s1999_s14 = smov %s1781_s18  ;;  %s2000_s15 = smov %s1660_s16 }
 0x158   : > { %s2001_s16 = smov %s2003_s5  ;;  %19 = sbr.rel (!%p17_p9) target bundleno = 9 (0x9), region = 93 }
 0x15d   :  { %1066 = vsyncpa [#allocation4], 1 }
 0x15e   :  { %1068 = vsyncpa [#allocation4 + $0x1], 1 }
 0x15f   :  { %1069 = vsyncpa [#allocation7], 1 }
 0x160   :  { %1070 = vsyncpa [#allocation5], 1 }
 0x161   :  { %1072 = vsyncpa [#allocation5 + $0x1], 1 }

</bundles_post_ra>
